<compile_context>
chip_gen: v6e
topology: v6e:2x2x1
jax: 0.10.0
libtpu: 0.0.40
codegen_flags: <defaults>
</compile_context>

<pallas_src>
import jax
import jax.numpy as jnp
from jax import lax
from jax.experimental import pallas as pl
from jax.experimental.pallas import tpu as pltpu

T = 30  # fixed by the module: nn.Linear(in_features=30, out_features=30)


def _make_kernel(block_b, group, total_b, needs_guard):
    """Build the kernel body for a given (static) batch tile / group size."""
    n_groups = block_b // group

    def kernel(x_ref, w_ref, b_ref, o_ref):
        # x_ref/o_ref: (block_b, T, H) block;  w_ref: (T, T);  b_ref: (T, 1)
        h = x_ref.shape[-1]

        # Hoisted loop invariants.
        w_bf = w_ref[...].astype(jnp.bfloat16)                               # (T, T)
        w_g = jnp.broadcast_to(w_bf[None], (group, T, T))                    # tiny, batched LHS
        b_th = jnp.broadcast_to(b_ref[...].astype(jnp.float32), (T, h))      # (T, H)
        base = pl.program_id(0) * block_b if needs_guard else None

        def body(g, carry):
            def compute():
                row0 = g * group
                xg = x_ref[pl.ds(row0, group)]                               # (G, T, H)
                xg_f32 = xg.astype(jnp.float32)                              # VPU path f32 (v5e)
                # Batched MXU matmul, single-pass bf16 operands, f32 accumulate.
                s = jnp.einsum(
                    "got,gth->goh", w_g, xg.astype(jnp.bfloat16),
                    preferred_element_type=jnp.float32)                      # (G, T, H)
                s = s + b_th                                                 # bias over o axis
                # Softmax over axis 1 (== softmax(dim=2) of permuted PyTorch view).
                m = jnp.max(s, axis=1, keepdims=True)                        # (G, 1, H)
                e = jnp.exp(s - m)                                           # (G, T, H)
                denom = jnp.sum(e, axis=1, keepdims=True)                    # (G, 1, H)
                inv = pl.reciprocal(denom, approx=True)                      # EUP slot
                o_ref[pl.ds(row0, group)] = (e * (xg_f32 * inv)).astype(o_ref.dtype)

            if needs_guard:
                # Skip groups entirely past the end of the batch (tail block);
                # the straddling group's extra rows are clipped on writeback.
                pl.when(base + g * group < total_b)(compute)
            else:
                compute()
            return carry

        # Short static trip count: unroll so MXU pushes / EUP exp / XLU
        # reductions / stores interleave across groups.
        lax.fori_loop(0, n_groups, body, 0,
                      unroll=True if n_groups <= 16 else 4)

    return kernel


def _pick_group(bt):
    for g in (8, 4, 2, 1):
        if bt % g == 0:
            return g
    return 1


def _choose_block_b(B, H, itemsize, group=8):
    """Batch tile that amortizes per-step overhead but stays VMEM-safe on all gens."""
    lanes = ((H + 127) // 128) * 128          # lane padding
    row_bytes = 32 * lanes * itemsize         # sublane pad 30 -> 32
    # input + output, each double-buffered by the pipeline (~4x); conservative
    # 12 MiB budget fits v5e (16 MiB scoped), v6e and v7x (32 MiB scoped / 64 MiB phys).
    budget = 12 * 1024 * 1024
    bt = max(1, budget // (4 * row_bytes))
    bt = min(bt, B)
    # Keep >= 4 grid steps when possible so each v7x TensorCore still gets
    # prefetch/writeback overlap (>= 2 steps per core).
    if B >= 4:
        bt = min(bt, -(-B // 4))
    elif B >= 2:
        bt = min(bt, -(-B // 2))
    # Round down to a multiple of the in-kernel group size.
    if bt > group:
        bt = (bt // group) * group
    # Prefer a tile that divides B (no serial waste on padded tail rows),
    # but never shrink below half the tile; otherwise the kernel guards the tail.
    if B % bt != 0:
        for cand in range(bt - 1, 0, -1):
            if B % cand == 0 and 2 * cand >= bt:
                bt = cand
                break
    return int(max(1, bt))


def attention_3d_block(inputs, weight, bias, *, block_b=None):
    """inputs: (B, T=30, H); weight: (30, 30); bias: (30,). Returns (B, T, H)."""
    B, T_, H = inputs.shape
    assert T_ == T, f"time dimension must be {T}, got {T_}"

    if block_b is None:
        block_b = _choose_block_b(B, H, jnp.dtype(inputs.dtype).itemsize)
    block_b = max(1, min(int(block_b), B))
    group = _pick_group(block_b)
    grid_b = pl.cdiv(B, block_b)
    needs_guard = (B % block_b) != 0

    kernel = _make_kernel(block_b, group, B, needs_guard)
    bias2d = bias.reshape(T, 1)

    return pl.pallas_call(
        kernel,
        out_shape=jax.ShapeDtypeStruct((B, T, H), inputs.dtype),
        grid_spec=pltpu.PrefetchScalarGridSpec(
            num_scalar_prefetch=0,
            grid=(grid_b,),
            in_specs=[
                pl.BlockSpec((block_b, T, H), lambda i: (i, 0, 0)),  # batch tile of x
                pl.BlockSpec((T, T), lambda i: (0, 0)),              # weight, VMEM-resident
                pl.BlockSpec((T, 1), lambda i: (0, 0)),              # bias, VMEM-resident
            ],
            out_specs=pl.BlockSpec((block_b, T, H), lambda i: (i, 0, 0)),
        ),
        compiler_params=pltpu.CompilerParams(
            dimension_semantics=("parallel",),
            vmem_limit_bytes=32 * 1024 * 1024,
        ),
    )(inputs, weight, bias2d)


def _reference(inputs, weight, bias):
    # Pure-JAX reference mirroring the PyTorch forward exactly (f32 everywhere).
    x = jnp.transpose(inputs, (0, 2, 1))                     # (B, H, T)
    z = jnp.einsum("bht,ot->bho", x, weight) + bias          # Linear: x @ W^T + b
    z = jax.nn.softmax(z, axis=2)                            # softmax(dim=2)
    x_probs = jnp.transpose(z, (0, 2, 1))                    # (B, T, H)
    return x_probs * inputs


if __name__ == "__main__":
    key = jax.random.PRNGKey(0)
    k_x, k_w, k_b = jax.random.split(key, 3)

    # Small shapes; H=128 keeps the output lane dimension dense (unmasked stores).
    B, H = 8, 128
    x = jax.random.normal(k_x, (B, T, H), dtype=jnp.float32)

    # Deterministic nn.Linear-style init: U(-1/sqrt(30), 1/sqrt(30))
    bound = 1.0 / (T ** 0.5)
    W = jax.random.uniform(k_w, (T, T), minval=-bound, maxval=bound, dtype=jnp.float32)
    b = jax.random.uniform(k_b, (T,), minval=-bound, maxval=bound, dtype=jnp.float32)

    out = jax.block_until_ready(attention_3d_block(x, W, b))
    ref = _reference(x, W, b)

    assert out.shape == (B, T, H)
    max_err = float(jnp.max(jnp.abs(out - ref)))
    # Tolerance covers the deliberate bf16 MXU operand cast (~1e-3-level abs
    # error on the softmax-weighted output) plus the EUP approx reciprocal.
    assert jnp.allclose(out, ref, atol=2e-2, rtol=2e-2), \
        f"mismatch vs reference (max abs err={max_err})"

    print("KERNEL_OK")
</pallas_src>

<mosaic_0001>
module attributes {stable_mosaic.version = 11 : i64} {
  func.func @kernel(%arg0: i32, %arg1: memref<2x30x128xf32, #tpu.memory_space<vmem>>, %arg2: memref<30x30xf32, #tpu.memory_space<vmem>>, %arg3: memref<30x1xf32, #tpu.memory_space<vmem>>, %arg4: memref<2x30x128xf32, #tpu.memory_space<vmem>>) attributes {dimension_semantics = [#tpu.dimension_semantics<parallel>], iteration_bounds = array<i64: 4>, scalar_prefetch = 0 : i64, scratch_operands = 0 : i64, tpu.core_type = #tpu.core_type<tc>, window_params = [{transform_indices = @transform_0, window_bounds = array<i64: 2, 30, 128>}, {pipeline_mode = #tpu.pipeline_mode<synchronous>, transform_indices = @transform_1, window_bounds = array<i64: 30, 30>}, {pipeline_mode = #tpu.pipeline_mode<synchronous>, transform_indices = @transform_2, window_bounds = array<i64: 30, 1>}, {transform_indices = @transform_3, window_bounds = array<i64: 2, 30, 128>}]} {
    %c0 = arith.constant 0 : index
    %c0_0 = arith.constant 0 : index
    %0 = vector.load %arg2[%c0, %c0_0] : memref<30x30xf32, #tpu.memory_space<vmem>>, vector<30x30xf32>
    %1 = arith.truncf %0 : vector<30x30xf32> to vector<30x30xbf16>
    %2 = vector.shape_cast %1 : vector<30x30xbf16> to vector<1x30x30xbf16>
    %3 = vector.shape_cast %2 : vector<1x30x30xbf16> to vector<1x30x30xbf16>
    %4 = vector.broadcast %3 : vector<1x30x30xbf16> to vector<2x30x30xbf16>
    %c0_1 = arith.constant 0 : index
    %c0_2 = arith.constant 0 : index
    %5 = vector.load %arg3[%c0_1, %c0_2] : memref<30x1xf32, #tpu.memory_space<vmem>>, vector<30x1xf32>
    %6 = vector.shape_cast %5 : vector<30x1xf32> to vector<30x1xf32>
    %7 = vector.broadcast %6 : vector<30x1xf32> to vector<30x128xf32>
    %c0_i32 = arith.constant 0 : i32
    %c2_i32 = arith.constant 2 : i32
    %8 = arith.muli %c0_i32, %c2_i32 : i32
    %9 = arith.index_cast %8 : i32 to index
    %c0_3 = arith.constant 0 : index
    %c0_4 = arith.constant 0 : index
    %10 = vector.load %arg1[%9, %c0_3, %c0_4] : memref<2x30x128xf32, #tpu.memory_space<vmem>>, vector<2x30x128xf32>
    %11 = arith.truncf %10 : vector<2x30x128xf32> to vector<2x30x128xbf16>
    "tpu.trace_start"() <{level = 10 : i32, message = "got,gth->goh"}> : () -> ()
    %cst = arith.constant dense<0.000000e+00> : vector<2x30x128xf32>
    %12 = tpu.matmul %4, %11, %cst {dimension_numbers = #tpu.dot_dimension_numbers<[2], [1], [1], [2], [0, 0, 0, 1, 1, 2], [0], [0]>} : vector<2x30x30xbf16>, vector<2x30x128xbf16>, vector<2x30x128xf32> -> vector<2x30x128xf32>
    "tpu.trace_stop"() : () -> ()
    %13 = vector.shape_cast %7 : vector<30x128xf32> to vector<1x30x128xf32>
    %14 = vector.broadcast %13 : vector<1x30x128xf32> to vector<2x30x128xf32>
    %15 = arith.addf %12, %14 : vector<2x30x128xf32>
    %cst_5 = arith.constant dense<0xFF800000> : vector<2x128xf32>
    %16 = vector.multi_reduction <maximumf>, %15, %cst_5 [1] : vector<2x30x128xf32> to vector<2x128xf32>
    %17 = vector.shape_cast %16 : vector<2x128xf32> to vector<2x1x128xf32>
    %18 = vector.broadcast %17 : vector<2x1x128xf32> to vector<2x30x128xf32>
    %19 = arith.subf %15, %18 : vector<2x30x128xf32>
    %20 = math.exp %19 : vector<2x30x128xf32>
    %cst_6 = arith.constant dense<0.000000e+00> : vector<2x128xf32>
    %21 = vector.multi_reduction <add>, %20, %cst_6 [1] : vector<2x30x128xf32> to vector<2x128xf32>
    %22 = vector.shape_cast %21 : vector<2x128xf32> to vector<2x1x128xf32>
    %23 = tpu.reciprocal %22 {approx = true} : vector<2x1x128xf32> -> vector<2x1x128xf32>
    %24 = vector.broadcast %23 : vector<2x1x128xf32> to vector<2x30x128xf32>
    %25 = arith.mulf %10, %24 : vector<2x30x128xf32>
    %26 = arith.mulf %20, %25 : vector<2x30x128xf32>
    %27 = arith.index_cast %8 : i32 to index
    %c0_7 = arith.constant 0 : index
    %c0_8 = arith.constant 0 : index
    %28 = vector.load %arg4[%27, %c0_7, %c0_8] : memref<2x30x128xf32, #tpu.memory_space<vmem>>, vector<2x30x128xf32>
    tpu.vector_store %arg4[%27, %c0_7, %c0_8], %26 {strides = array<i32>} : memref<2x30x128xf32, #tpu.memory_space<vmem>>, vector<2x30x128xf32>,
    %c1_i32 = arith.constant 1 : i32
    return
  }
  func.func @transform_0(%arg0: i32) -> (i32, i32, i32) {
    %c0_i32 = arith.constant 0 : i32
    %c0_i32_0 = arith.constant 0 : i32
    %c0_i32_1 = arith.constant 0 : i32
    return %arg0, %c0_i32, %c0_i32_0 : i32, i32, i32
  }
  func.func @transform_1(%arg0: i32) -> (i32, i32) {
    %c0_i32 = arith.constant 0 : i32
    %c0_i32_0 = arith.constant 0 : i32
    %c0_i32_1 = arith.constant 0 : i32
    return %c0_i32, %c0_i32_0 : i32, i32
  }
  func.func @transform_2(%arg0: i32) -> (i32, i32) {
    %c0_i32 = arith.constant 0 : i32
    %c0_i32_0 = arith.constant 0 : i32
    %c0_i32_1 = arith.constant 0 : i32
    return %c0_i32, %c0_i32_0 : i32, i32
  }
  func.func @transform_3(%arg0: i32) -> (i32, i32, i32) {
    %c0_i32 = arith.constant 0 : i32
    %c0_i32_0 = arith.constant 0 : i32
    %c0_i32_1 = arith.constant 0 : i32
    return %arg0, %c0_i32, %c0_i32_0 : i32, i32, i32
  }
}

</mosaic_0001>

<bundles_post_ra>
// kernel: tpu_custom_call.1
= control target key start
LH: loop header
LB: loop body
LE: loop exit
PB: predicated region body
PF: predicated region fallthrough
CT: control target
= control target key end

     0   :  { %s588_s12 = smov 0   ;;  %s680_s0 = inlined_call_operand.vmem [shape: f32[8,30,128], index: 0, kind: input, shape index: {}]   ;;  %s681_s1 = inlined_call_operand.vmem [shape: f32[30,30], index: 1, kind: input, shape index: {}]   ;;  %s682_s2 = inlined_call_operand.vmem [shape: f32[30,1], index: 2, kind: input, shape index: {}]   ;;  %s683_s3 = inlined_call_operand.vmem [shape: f32[8,30,128], index: 3, kind: output, shape index: {}]  }
   0x1 LB: > { %s483_s13 = sadd.s32 4294967295, %s565_s12   ;;  %p487_p0 = scmp.ge.s32.totalorder %s565_s12, 1  ;;  %s565_s12 = sphi %s588_s12, %s13_s12  }
   0x2   : > { %p139_p1 = scmp.lt.s32.totalorder %s565_s12, 5 }
   0x4   : > { %p140_p2 = pnand %p487_p0, %p139_p1 }
   0x5   : > { %s488_s14 = sshll.u32 (!%p140_p2), %s483_s13, 1 }
   0x6   : > { %143 = sbr.rel (%p140_p2) target bundleno = 304 (0x130), region = 32  ;;  %p166_p3 = scmp.lt.s32.totalorder (!%p140_p2), %s488_s14, 7 }
   0xb   : > { %v180_v0 = vld [vmem:[%s681_s1] sm:$0xff]  ;;  %v181_v1 = vld [vmem:[%s681_s1 + $0x8] sm:$0xff]  ;;  %vm222_vm0 = vcmask 244736   ;;  %v567_v4 = vmov 0   ;;  %v189_v5 = vld [vmem:[%s682_s2 + $0x18] sm:$0x3f] }
   0xc   : > { %v184_v2 = vpack.c.bf16 %v181_v1, %v180_v0  ;;  %v187_v3 = vld [vmem:[%s682_s2 + $0x8] sm:$0xff]  ;;  %538 = vset.pattern.permute.xlu1 %v567_v4  ;;  %537 = vset.pattern.permute.xlu0 %v567_v4  ;;  %s685_s14 = smov (!%p166_p3, %s488_s14), 7  ;;  %v188_v6 = vld [vmem:[%s682_s2 + $0x10] sm:$0xff]  ;;  %v186_v7 = vld [vmem:[%s682_s2] sm:$0xff]  ;;  %vm229_vm1 = vcmask 1046528   ;;  %vm335_vm2 = vcmask 1045504  }
   0xd   : > { %209 = vperm.xlu1 %538, %v187_v3   ;;  %219 = vperm.xlu0 %537, %v189_v5   ;;  %s500_s23 = sshll.u32 %s685_s14, 5  ;;  %v182_v22 = vld [vmem:[%s681_s1 + $0x10] sm:$0xff]  ;;  %v183_v23 = vld [vmem:[%s681_s1 + $0x18] sm:$0x3f] }
   0xe   : > { %514 = vmatprep.mubr.msk.bf16.mxu0 %vm222_vm0, %v184_v2  ;;  %522 = vmatprep.mubr.msk.bf16.mxu1 %vm222_vm0, %v184_v2  ;;  %s170_s30 = scalar_lea.vmem %s680_s0, %s500_s23  ;;  %v185_v24 = vpack.c.bf16 %v183_v23, %v182_v22  ;;  %s177_s10 = scalar_lea.vmem %s683_s3, %s500_s23 }
   0xf   : > { %v624_v8 = vld [vmem:[%s170_s30 + $0x10] sm:$0xff]  ;;  %v626_v9 = vld [vmem:[%s170_s30 + $0x18] sm:$0x3f]  ;;  %v634_v13 = vld [vmem:[%s170_s30] sm:$0xff] }
  0x10   : > { %v628_v10 = vld [vmem:[%s170_s30 + $0x30] sm:$0xff]  ;;  %v199_v11 = vpack.c.bf16 %v626_v9, %v624_v8  ;;  %v632_v12 = vld [vmem:[%s170_s30 + $0x38] sm:$0x3f]  ;;  %v636_v14 = vld [vmem:[%s170_s30 + $0x8] sm:$0xff] }
  0x11   : > { %214 = vperm.xlu1 %538, %v188_v6   ;;  %204 = vperm.xlu0 %537, %v186_v7   ;;  %v201_v15 = vpack.c.bf16 %v632_v12, %v628_v10  ;;  %v198_v16 = vpack.c.bf16 %v636_v14, %v634_v13  ;;  %v642_v17 = vld [vmem:[%s170_s30 + $0x20] sm:$0xff]  ;;  %v644_v18 = vld [vmem:[%s170_s30 + $0x28] sm:$0xff] }
  0x12   : > { %526 = vmatprep.subr.msk.bf16.mxu0 %vm229_vm1, %v199_v11  ;;  %v231_v19 = vsel %vm229_vm1, %v199_v11, 0  ;;  %v200_v20 = vpack.c.bf16 %v644_v18, %v642_v17 }
  0x13   : > { %527 = vmatprep.subr.msk.bf16.mxu1 %vm229_vm1, %v201_v15  ;;  %511 = vmatpush3.bf16.msra.mxu0 %v231_v19  ;;  %v283_v21 = vsel %vm229_vm1, %v201_v15, 0 }
  0x14   : > { %519 = vmatpush3.bf16.msra.mxu1 %v283_v21  ;;  %512 = vmatprep.subr.bf16.mxu0 %v198_v16 }
  0x15   : > { %520 = vmatprep.subr.bf16.mxu1 %v200_v20 }
  0x17   : > { %513 = vmatpush3.bf16.msra.mxu0 %v198_v16 }
  0x18   : > { %521 = vmatpush3.bf16.msra.mxu1 %v200_v20 }
  0x1a   : > { %515 = vmatmul.mubr.msk.bf16.vlgmr.msra.gmra.mxu0 %vm222_vm0, %v185_v24 }
  0x1b   : > { %523 = vmatmul.mubr.msk.bf16.vlgmr.msra.gmra.mxu1 %vm222_vm0, %v185_v24 }
  0x88   : > { %v220_v25 = vpop.permute.xlu0 %219  ;;  %v210_v26 = vpop.permute.xlu1 %209 }
  0x8c   : > { %v205_v29 = vpop.permute.xlu0 %204  ;;  %v215_v31 = vpop.permute.xlu1 %214 }
  0xda   : > { %v516_v27 = vpop.f32.mrf.mxu0 }
  0xdb   : > { %v524_v28 = vpop.f32.mrf.mxu1  ;;  %v276_v41 = vadd.f32 %v516_v27, %v215_v31 }
  0xdc   : > { %v267_v30 = vpop.f32.mrf.mxu0  ;;  %v328_v37 = vadd.f32 %v524_v28, %v215_v31 }
  0xdd   : > { %v319_v32 = vpop.f32.mrf.mxu1  ;;  %v268_v34 = vadd.f32 %v267_v30, %v205_v29 }
  0xde   : > { %v517_v33 = vpop.f32.mrf.mxu0  ;;  %v320_v38 = vadd.f32 %v319_v32, %v205_v29 }
  0xdf   : > { %v279_v35 = vadd.f32 %v517_v33, %v220_v25  ;;  %v525_v36 = vpop.f32.mrf.mxu1  ;;  %v334_v47 = vmax.f32 %v268_v34, %v276_v41 }
  0xe0   : > { %v331_v39 = vadd.f32 %v525_v36, %v220_v25  ;;  %v270_v40 = vpop.f32.mrf.mxu0  ;;  %v345_v49 = vmax.f32 %v320_v38, %v328_v37 }
  0xe1   : > { %v336_v42 = vsel %vm335_vm2, %v279_v35, -inf  ;;  %v271_v43 = vadd.f32 %v270_v40, %v210_v26  ;;  %v322_v44 = vpop.f32.mrf.mxu1 }
  0xe2   : > { %v346_v45 = vsel %vm335_vm2, %v331_v39, -inf  ;;  %v323_v46 = vadd.f32 %v322_v44, %v210_v26 }
  0xe3   : > { %v337_v48 = vmax.f32 %v271_v43, %v336_v42 }
  0xe4   : > { %v347_v50 = vmax.f32 %v323_v46, %v346_v45 }
  0xe5   : > { %v338_v51 = vmax.f32 %v334_v47, %v337_v48 }
  0xe6   : > { %v348_v52 = vmax.f32 %v345_v49, %v347_v50 }
  0xe7   : > { %v339_v53 = vrot.slane %v338_v51, 4 }
  0xe8   : > { %v349_v54 = vrot.slane %v348_v52, 4 }
  0xe9   : > { %v340_v55 = vmax.f32 %v338_v51, %v339_v53 }
  0xea   : > { %v350_v56 = vmax.f32 %v348_v52, %v349_v54 }
  0xeb   : > { %v341_v57 = vrot.slane %v340_v55, 2 }
  0xec   : > { %v351_v58 = vrot.slane %v350_v56, 2 }
  0xed   : > { %v342_v59 = vmax.f32 %v340_v55, %v341_v57 }
  0xee   : > { %v352_v60 = vmax.f32 %v350_v56, %v351_v58 }
  0xef   : > { %v343_v61 = vrot.slane %v342_v59, 1 }
  0xf0   : > { %v353_v62 = vrot.slane %v352_v60, 1 }
  0xf1   : > { %v344_v63 = vmax.f32 %v342_v59, %v343_v61 }
  0xf2   : > { %v354_v0 = vmax.f32 %v352_v60, %v353_v62 }
  0xf3   : > { %v355_v1 = vsub.f32 %v268_v34, %v344_v63  ;;  %v356_v2 = vsub.f32 %v271_v43, %v344_v63  ;;  %v357_v3 = vsub.f32 %v276_v41, %v344_v63  ;;  %v358_v4 = vsub.f32 %v279_v35, %v344_v63 }
  0xf4   : > { %v359_v5 = vsub.f32 %v320_v38, %v354_v0  ;;  %v360_v6 = vsub.f32 %v323_v46, %v354_v0  ;;  %v361_v16 = vsub.f32 %v328_v37, %v354_v0  ;;  %v362_v20 = vsub.f32 %v331_v39, %v354_v0 }
  0xf5   : > { %v363_v7 = vmul.f32 1.442695, %v355_v1  ;;  %v365_v11 = vmul.f32 1.442695, %v356_v2  ;;  %v367_v15 = vmul.f32 1.442695, %v357_v3 }
  0xf6   : > { %v369_v19 = vmul.f32 1.442695, %v358_v4  ;;  %v371_v21 = vmul.f32 1.442695, %v359_v5  ;;  %v373_v22 = vmul.f32 1.442695, %v360_v6 }
  0xf7   : > { %539 = vpow2.f32 %v363_v7  ;;  %v375_v23 = vmul.f32 1.442695, %v361_v16  ;;  %v377_v24 = vmul.f32 1.442695, %v362_v20 }
  0xf8   : > { %541 = vpow2.f32 %v365_v11 }
  0xf9   : > { %543 = vpow2.f32 %v367_v15 }
  0xfa   : > { %545 = vpow2.f32 %v369_v19 }
  0xfb   : > { %547 = vpow2.f32 %v371_v21 }
  0xfc   : > { %549 = vpow2.f32 %v373_v22 }
  0xfd   : > { %551 = vpow2.f32 %v375_v23 }
  0xfe   : > { %553 = vpow2.f32 %v377_v24 }
 0x104   : > { %v540_v25 = vpop.eup %539 }
 0x105   : > { %v542_v26 = vpop.eup %541 }
 0x106   : > { %v544_v27 = vpop.eup %543  ;;  %v379_v28 = vadd.f32 %v542_v26, %v540_v25 }
 0x107   : > { %v546_v29 = vpop.eup %545 }
 0x108   : > { %v548_v30 = vpop.eup %547  ;;  %v380_v31 = vadd.f32 %v544_v27, %v379_v28  ;;  %v381_v33 = vsel %vm335_vm2, %v546_v29, 0.0 }
 0x109   : > { %v550_v32 = vpop.eup %549 }
 0x10a   : > { %v552_v34 = vpop.eup %551  ;;  %v382_v35 = vadd.f32 %v381_v33, %v380_v31  ;;  %v389_v36 = vadd.f32 %v550_v32, %v548_v30 }
 0x10b   : > { %v554_v37 = vpop.eup %553 }
 0x10c   : > { %v383_v38 = vrot.slane %v382_v35, 4  ;;  %v390_v39 = vadd.f32 %v552_v34, %v389_v36  ;;  %v391_v40 = vsel %vm335_vm2, %v554_v37, 0.0 }
 0x10e   : > { %v384_v41 = vadd.f32 %v383_v38, %v382_v35  ;;  %v392_v42 = vadd.f32 %v391_v40, %v390_v39 }
 0x110   : > { %v385_v43 = vrot.slane %v384_v41, 2  ;;  %v393_v44 = vrot.slane %v392_v42, 4 }
 0x112   : > { %v386_v45 = vadd.f32 %v385_v43, %v384_v41  ;;  %v394_v46 = vadd.f32 %v393_v44, %v392_v42 }
 0x114   : > { %v387_v47 = vrot.slane %v386_v45, 1  ;;  %v395_v48 = vrot.slane %v394_v46, 2 }
 0x116   : > { %v388_v49 = vadd.f32 %v387_v47, %v386_v45  ;;  %v396_v50 = vadd.f32 %v395_v48, %v394_v46 }
 0x118   : > { %555 = vrcp.f32 %v388_v49  ;;  %v397_v51 = vrot.slane %v396_v50, 1 }
 0x11a   : > { %v398_v52 = vadd.f32 %v397_v51, %v396_v50 }
 0x11c   : > { %557 = vrcp.f32 %v398_v52 }
 0x125   : > { %v556_v53 = vpop.eup %555 }
 0x126   : > { %v401_v54 = vmul.f32 %v556_v53, %v634_v13  ;;  %v402_v55 = vmul.f32 %v556_v53, %v636_v14  ;;  %v403_v56 = vmul.f32 %v556_v53, %v624_v8  ;;  %v404_v57 = vmul.f32 %v556_v53, %v626_v9 }
 0x128   : > { %v409_v58 = vmul.f32 %v540_v25, %v401_v54  ;;  %v410_v59 = vmul.f32 %v542_v26, %v402_v55  ;;  %v411_v60 = vmul.f32 %v544_v27, %v403_v56  ;;  %v412_v61 = vmul.f32 %v546_v29, %v404_v57 }
 0x129   : > { %v558_v62 = vpop.eup %557 }
 0x12a   : > { %417 = vst [vmem:[%s177_s10] sm:$0xff] %v409_v58  ;;  %418 = vst [vmem:[%s177_s10 + $0x8] sm:$0xff] %v410_v59  ;;  %v405_v13 = vmul.f32 %v558_v62, %v642_v17  ;;  %v406_v8 = vmul.f32 %v558_v62, %v644_v18  ;;  %v407_v9 = vmul.f32 %v558_v62, %v628_v10 }
 0x12b   : > { %419 = vst [vmem:[%s177_s10 + $0x10] sm:$0xff] %v411_v60  ;;  %420 = vst [vmem:[%s177_s10 + $0x18] sm:$0x3f] %v412_v61  ;;  %v408_v14 = vmul.f32 %v558_v62, %v632_v12 }
 0x12c   : > { %v413_v63 = vmul.f32 %v548_v30, %v405_v13  ;;  %v414_v0 = vmul.f32 %v550_v32, %v406_v8  ;;  %v415_v1 = vmul.f32 %v552_v34, %v407_v9 }
 0x12d   : > { %v416_v2 = vmul.f32 %v554_v37, %v408_v14 }
 0x12e   : > { %421 = vst [vmem:[%s177_s10 + $0x20] sm:$0xff] %v413_v63  ;;  %422 = vst [vmem:[%s177_s10 + $0x28] sm:$0xff] %v414_v0 }
 0x12f   : > { %423 = vst [vmem:[%s177_s10 + $0x30] sm:$0xff] %v415_v1  ;;  %424 = vst [vmem:[%s177_s10 + $0x38] sm:$0x3f] %v416_v2 }
 0x130 PF: > { %s13_s12 = sadd.s32 1, %s565_s12  }
 0x131   : > { %p10_p4 = scmp.ge.s32.totalorder %s13_s12, 6  }
 0x133   :  { %12 = sbr.rel (!%p10_p4) target bundleno = 1 (0x1), region = 62 }

</bundles_post_ra>
